<compile_context>
chip_gen: v7x
topology: tpu7x:2x2x1
jax: 0.10.0
libtpu: 0.0.40
codegen_flags: <defaults>
</compile_context>

<pallas_src>
import jax
import jax.numpy as jnp
from jax.experimental import pallas as pl
from jax.experimental.pallas import tpu as pltpu


# --------------------------------------------------------------------------- #
# Kernel body (pure VPU work on one VMEM tile)
# --------------------------------------------------------------------------- #
def _exp_poly_kernel(x_ref, o_ref):
    x = x_ref[...].astype(jnp.float32)
    y2 = x * x * 0.5
    y3 = y2 * 0.03333333333333328
    y4 = y2 * y2 * 0.08333333333333333
    o_ref[...] = (x + y2 + (y3 + y4) + 1.0).astype(o_ref.dtype)


def _exp_poly_jnp(x):
    """Plain-jnp tail path, mirrors the kernel (f32 compute, cast back)."""
    xf = x.astype(jnp.float32)
    y2 = xf * xf * 0.5
    out = xf + y2 + (y2 * 0.03333333333333328 + y2 * y2 * 0.08333333333333333) + 1.0
    return out.astype(x.dtype)


_LANE = 128
_WIDTH_CANDIDATES = (4096, 2048, 1024, 512, 256, 128)


def _sublane_multiple(dtype) -> int:
    # Sub-32-bit dtypes pack along sublanes: f32 -> 8, bf16 -> 16, int8/fp8 -> 32.
    itemsize = jnp.dtype(dtype).itemsize
    return max(8, 32 // max(itemsize, 1))


def _chip_config():
    """Returns (target_block_bytes, vmem_limit_bytes_or_None, multi_core)."""
    kind = ""
    try:
        kind = jax.devices()[0].device_kind.lower()
    except Exception:
        pass
    vmem_cap = None
    try:
        vmem_cap = int(pltpu.get_tpu_info().vmem_capacity_bytes)
    except Exception:
        pass
    # v7x: ~3.2 TB/s HBM -> 8 MiB tiles cut the ~0.35 us per-step overhead to
    # ~5%; in+out double-buffered = 32 MiB exceeds the 32 MiB scoped default,
    # so raise the limit explicitly.  v7x also has 2 TensorCores (64 MiB VMEM
    # per TC), so ask the caller to keep >=2 grid steps.
    is_v7x = ("7" in kind) or (vmem_cap is not None and vmem_cap <= (64 << 20))
    if is_v7x:
        return 8 << 20, 40 << 20, True
    # v6e: ~1.4 TB/s HBM -> 4 MiB tiles; 16 MiB working set fits the 32 MiB
    # scoped default, no flag change needed.
    if "v6" in kind or "6e" in kind:
        return 4 << 20, None, False
    # v5e / unknown: 2 MiB tiles stay safely inside the 16 MiB scoped default.
    return 2 << 20, None, False


def _exp_poly_slab(x2d: jax.Array, *, donate: bool = False) -> jax.Array:
    """Run the polynomial on a (rows, width) slab; width must be a multiple of 128."""
    rows, width = x2d.shape
    dtype = x2d.dtype
    itemsize = jnp.dtype(dtype).itemsize
    sub = _sublane_multiple(dtype)
    block_bytes, vmem_limit, multi_core = _chip_config()

    # Full-width row tiles of ~block_bytes, rows tiled in sublane multiples.
    tile_rows = block_bytes // (width * itemsize)
    tile_rows = max(sub, (tile_rows // sub) * sub)
    # v7x: make sure the "parallel" grid axis has >= 2 steps so both
    # TensorCores get work when the whole slab would fit in one tile.
    if multi_core and rows >= 2 * sub and tile_rows >= rows:
        tile_rows = sub * pl.cdiv(pl.cdiv(rows, 2), sub)
    tile_rows = min(tile_rows, rows)      # == full rows dim if slab is small
    grid = (pl.cdiv(rows, tile_rows),)    # partial last block is fine (elementwise)

    cparams = dict(dimension_semantics=("parallel",))
    if vmem_limit is not None:
        cparams["vmem_limit_bytes"] = int(vmem_limit)

    return pl.pallas_call(
        _exp_poly_kernel,
        out_shape=jax.ShapeDtypeStruct((rows, width), dtype),
        grid_spec=pltpu.PrefetchScalarGridSpec(
            num_scalar_prefetch=0,
            grid=grid,
            in_specs=[pl.BlockSpec((tile_rows, width), lambda i: (i, 0))],
            out_specs=pl.BlockSpec((tile_rows, width), lambda i: (i, 0)),
        ),
        compiler_params=pltpu.CompilerParams(**cparams),
        cost_estimate=pl.CostEstimate(
            flops=7 * rows * width,
            transcendentals=0,
            bytes_accessed=2 * rows * width * itemsize,
        ),
        # Optional in-place variant: frees one full-size HBM buffer when the
        # caller can donate x (HBM traffic is unchanged: one read + one write).
        input_output_aliases=({0: 0} if donate else {}),
    )(x2d)


def exp_poly_pallas(x: jax.Array, *, donate: bool = False) -> jax.Array:
    """Elementwise polynomial-exp. Accepts any shape; computes on a 2D slab."""
    orig_shape = x.shape
    dtype = x.dtype
    total = x.size
    if total == 0:
        return x
    sub = _sublane_multiple(dtype)

    # ---- Copy-free, lane-dense 2D view --------------------------------------
    # Tier 1: width that also leaves a sublane-aligned row count (best packing).
    width = None
    for w in _WIDTH_CANDIDATES:
        if total % w == 0 and (total // w) % sub == 0:
            width = w
            break
    # Tier 2: any lane-multiple width that divides the element count.  The
    # (8,128) constraint applies to block_shape (already sublane-aligned), not
    # the array's row count; a partial last row-block handles the remainder.
    if width is None:
        for w in _WIDTH_CANDIDATES:
            if total % w == 0:
                width = w
                break

    if width is not None:
        out2d = _exp_poly_slab(x.reshape(total // width, width), donate=donate)
        return out2d.reshape(orig_shape)

    # ---- Ragged fallback (element count not divisible by 128) ---------------
    # Process the aligned bulk through the kernel and the tiny (<128 element)
    # tail with plain jnp.  Avoids full-array jnp.pad + output-slice passes.
    width = _LANE
    bulk = (total // width) * width
    x_flat = x.reshape(-1)
    pieces = []
    if bulk:
        out_bulk = _exp_poly_slab(x_flat[:bulk].reshape(bulk // width, width))
        pieces.append(out_bulk.reshape(-1))
    if bulk != total:
        pieces.append(_exp_poly_jnp(x_flat[bulk:]))
    out_flat = pieces[0] if len(pieces) == 1 else jnp.concatenate(pieces)
    return out_flat.reshape(orig_shape)


if __name__ == "__main__":
    key = jax.random.PRNGKey(0)

    # NCHW input: batch=2, channels=4, spatial=16x16 (2048 elems -> (8, 256) slab).
    x = jax.random.normal(key, (2, 4, 16, 16), dtype=jnp.float32)
    y = exp_poly_pallas(x)
    jax.block_until_ready(y)

    # Pure-JAX reference matching the PyTorch forward exactly.
    t = x * x * 0.5
    y_ref = x + t + (t * 0.03333333333333328 + t * t * 0.08333333333333333) + 1.0
    assert y.shape == x.shape and y.dtype == x.dtype
    assert jnp.allclose(y, y_ref, rtol=1e-6, atol=1e-6), "mismatch vs reference"

    # Exercise the relaxed fast path (rows not a sublane multiple): 3*5*128 elems.
    xb = jax.random.normal(jax.random.PRNGKey(0), (3, 5, 128), dtype=jnp.float32)
    yb = exp_poly_pallas(xb)
    jax.block_until_ready(yb)
    tb = xb * xb * 0.5
    yb_ref = xb + tb + (tb * 0.03333333333333328 + tb * tb * 0.08333333333333333) + 1.0
    assert jnp.allclose(yb, yb_ref, rtol=1e-6, atol=1e-6), "mismatch (relaxed path)"

    # Exercise the ragged-tail path (195 elems: 128-elem bulk kernel + jnp tail).
    xc = jax.random.normal(jax.random.PRNGKey(0), (3, 5, 13), dtype=jnp.float32)
    yc = exp_poly_pallas(xc)
    jax.block_until_ready(yc)
    tc = xc * xc * 0.5
    yc_ref = xc + tc + (tc * 0.03333333333333328 + tc * tc * 0.08333333333333333) + 1.0
    assert jnp.allclose(yc, yc_ref, rtol=1e-6, atol=1e-6), "mismatch (ragged path)"

    print("KERNEL_OK")
</pallas_src>

<mosaic_0001>
module attributes {stable_mosaic.version = 11 : i64} {
  func.func @_exp_poly_kernel(%arg0: i32, %arg1: memref<8x256xf32, #tpu.memory_space<vmem>>, %arg2: memref<8x256xf32, #tpu.memory_space<vmem>>) attributes {dimension_semantics = [#tpu.dimension_semantics<parallel>], iteration_bounds = array<i64: 1>, scalar_prefetch = 0 : i64, scratch_operands = 0 : i64, tpu.core_type = #tpu.core_type<tc>, window_params = [{transform_indices = @transform_0, window_bounds = array<i64: 8, 256>}, {transform_indices = @transform_1, window_bounds = array<i64: 8, 256>}]} {
    %c0 = arith.constant 0 : index
    %c0_0 = arith.constant 0 : index
    %0 = vector.load %arg1[%c0, %c0_0] : memref<8x256xf32, #tpu.memory_space<vmem>>, vector<8x256xf32>
    %1 = arith.mulf %0, %0 : vector<8x256xf32>
    %cst = arith.constant 5.000000e-01 : f32
    %2 = vector.broadcast %cst : f32 to vector<8x256xf32>
    %3 = arith.mulf %1, %2 : vector<8x256xf32>
    %cst_1 = arith.constant 0.0333333351 : f32
    %4 = vector.broadcast %cst_1 : f32 to vector<8x256xf32>
    %5 = arith.mulf %3, %4 : vector<8x256xf32>
    %6 = arith.mulf %3, %3 : vector<8x256xf32>
    %cst_2 = arith.constant 0.0833333358 : f32
    %7 = vector.broadcast %cst_2 : f32 to vector<8x256xf32>
    %8 = arith.mulf %6, %7 : vector<8x256xf32>
    %9 = arith.addf %0, %3 : vector<8x256xf32>
    %10 = arith.addf %5, %8 : vector<8x256xf32>
    %11 = arith.addf %9, %10 : vector<8x256xf32>
    %cst_3 = arith.constant 1.000000e+00 : f32
    %12 = vector.broadcast %cst_3 : f32 to vector<8x256xf32>
    %13 = arith.addf %11, %12 : vector<8x256xf32>
    %c0_4 = arith.constant 0 : index
    %c0_5 = arith.constant 0 : index
    %14 = vector.load %arg2[%c0_4, %c0_5] : memref<8x256xf32, #tpu.memory_space<vmem>>, vector<8x256xf32>
    tpu.vector_store %arg2[%c0_4, %c0_5], %13 {strides = array<i32>} : memref<8x256xf32, #tpu.memory_space<vmem>>, vector<8x256xf32>,
    return
  }
  func.func @transform_0(%arg0: i32) -> (i32, i32) {
    %c0_i32 = arith.constant 0 : i32
    %c0_i32_0 = arith.constant 0 : i32
    return %arg0, %c0_i32 : i32, i32
  }
  func.func @transform_1(%arg0: i32) -> (i32, i32) {
    %c0_i32 = arith.constant 0 : i32
    %c0_i32_0 = arith.constant 0 : i32
    return %arg0, %c0_i32 : i32, i32
  }
}

</mosaic_0001>

<bundles_post_ra>
// kernel: tpu_custom_call.1
= control target key start
LH: loop header
LB: loop body
LE: loop exit
PB: predicated region body
PF: predicated region fallthrough
CT: control target
= control target key end

     0   :  { %6 = vsyncpa [#allocation3], 0  ;;  %s144_s0 = inlined_call_operand.hbm [shape: f32[8,256], index: 0, kind: input, shape index: {}]   ;;  %s145_s1 = inlined_call_operand.hbm [shape: f32[8,256], index: 1, kind: output, shape index: {}]  }
   0x1   :  { %7 = vsyncpa [#allocation4], 0  ;;  %s108_s6 = smov [#allocation2]   ;;  %s60_s10 = scalar_lea.hbm %s144_s0, 256 }
   0x2   :  { %s14_s7 = sshll.u32 %s108_s6, 4  ;;  %p61_p0 = scmp.ne.s32.totalorder %s144_s0, %s60_s10  ;;  %s15_s7 = int_to_ptr.vmem [resolvable:$true] %s14_s7 }
   0x3   :  { %p64_p1 = scmp.lt.u32.totalorder %s60_s10, %s144_s0 }
   0x5   :  { %p66_p2 = pnand %p64_p1, %p61_p0 }
   0x7   :  { %69 = shalt.err (!%p66_p2)
}
   0x8   :  { %s70_s15 = scalar_lea.vmem %s15_s7, 256  ;;  %p75_p4 = scmp.lt.s32.totalorder %s15_s7, %s15_s7 }
   0x9   :  { %p71_p3 = scmp.ne.s32.totalorder %s15_s7, %s70_s15  ;;  %p76_p5 = scmp.lt.s32.totalorder %s70_s15, %s70_s15 }
   0xb   :  { %p77_p6 = por %p76_p5, %p75_p4 }
   0xd   :  { %p78_p7 = pnand %p77_p6, %p71_p3 }
   0xf   :  { %81 = shalt.err (!%p78_p7)
}
  0x10   :  { %17 = dma.hbm_to_vmem [thread:$0]  %s144_s0, 256, %s15_s7, [#allocation3]  }
  0x11   :  { %104 = dma.done.wait [#allocation3], 256  }
  0x12   :  { %105 = vsyncadd [#allocation3], 4294967040  ;;  %v21_v0 = vld [vmem:[#allocation2] sm:$0xff]  ;;  %v22_v1 = vld [vmem:[#allocation2 + $0x8] sm:$0xff]  ;;  %s109_s0 = smov [#allocation5]  }
  0x13   :  { %v23_v2 = vmul.f32 %v21_v0, %v21_v0  ;;  %v24_v3 = vmul.f32 %v22_v1, %v22_v1  ;;  %s49_s18 = sshll.u32 %s109_s0, 4  ;;  %s50_s18 = int_to_ptr.vmem [resolvable:$true] %s49_s18 }
  0x14   :  { %s82_s19 = scalar_lea.vmem %s50_s18, 256  ;;  %p87_p9 = scmp.lt.s32.totalorder %s50_s18, %s50_s18 }
  0x15   :  { %v25_v4 = vmul.f32 0.5, %v23_v2  ;;  %v26_v5 = vmul.f32 0.5, %v24_v3  ;;  %p83_p8 = scmp.ne.s32.totalorder %s50_s18, %s82_s19  ;;  %p88_p10 = scmp.lt.s32.totalorder %s82_s19, %s82_s19 }
  0x17   :  { %v27_v6 = vmul.f32 0.033333335, %v25_v4  ;;  %v29_v7 = vmul.f32 %v25_v4, %v25_v4  ;;  %v28_v8 = vmul.f32 0.033333335, %v26_v5  ;;  %v30_v9 = vmul.f32 %v26_v5, %v26_v5  ;;  %p89_p11 = por %p88_p10, %p87_p9 }
  0x18   :  { %v33_v11 = vadd.f32 %v25_v4, %v21_v0  ;;  %v34_v13 = vadd.f32 %v26_v5, %v22_v1 }
  0x19   :  { %v31_v10 = vmul.f32 0.083333336, %v29_v7  ;;  %v32_v12 = vmul.f32 0.083333336, %v30_v9  ;;  %p90_p12 = pnand %p89_p11, %p83_p8 }
  0x1b   :  { %v35_v14 = vadd.f32 %v31_v10, %v27_v6  ;;  %v36_v15 = vadd.f32 %v32_v12, %v28_v8 }
  0x1d   :  { %v37_v16 = vadd.f32 %v35_v14, %v33_v11  ;;  %v38_v17 = vadd.f32 %v36_v15, %v34_v13 }
  0x1f   :  { %v39_v18 = vadd.f32 1.0, %v37_v16  ;;  %v40_v19 = vadd.f32 1.0, %v38_v17 }
  0x21   :  { %41 = vst [vmem:[#allocation5] sm:$0xff] %v39_v18  ;;  %42 = vst [vmem:[#allocation5 + $0x8] sm:$0xff] %v40_v19 }
  0x22   :  { %93 = shalt.err (!%p90_p12)
}
  0x23   :  { %s94_s22 = scalar_lea.hbm %s145_s1, 256 }
  0x24   :  { %p95_p13 = scmp.ne.s32.totalorder %s145_s1, %s94_s22  ;;  %p98_p0 = scmp.lt.u32.totalorder %s94_s22, %s145_s1 }
  0x26   :  { %p100_p1 = pnand %p98_p0, %p95_p13 }
  0x28   :  { %103 = shalt.err (!%p100_p1)
}
  0x29   :  { %52 = dma.vmem_to_hbm [thread:$0]  %s50_s18, 256, %s145_s1, [#allocation4]  }
  0x2a   :  { %106 = dma.done.wait [#allocation4], 256  }
  0x2b   :  { %107 = vsyncadd [#allocation4], 4294967040 }
  0x2c   :  { %56 = vsyncpa [#allocation3], 1 }
  0x2d   :  { %57 = vsyncpa [#allocation4], 1 }

</bundles_post_ra>
